<compile_context>
chip_gen: v6e
topology: v6e:2x2x1
jax: 0.10.0
libtpu: 0.0.40
codegen_flags: <defaults>
</compile_context>

<pallas_src>
import functools
import math

import jax
import jax.numpy as jnp
from jax.experimental import pallas as pl
from jax.experimental.pallas import tpu as pltpu


_LANE = 128              # tiled (non-full) dims must be multiples of the lane width
_MIN_TILEABLE_DIM = 32   # below this, XLA's relayout beats a lane-sparse kernel
_SUB = 256               # in-kernel sub-tile edge for the chunked transpose


def _vmem_config():
    """Returns (per-block byte budget, vmem_limit_bytes), generation-aware.

    v5e/v6e have 128 MiB physical VMEM -> bigger tiles & a 64 MiB scoped limit;
    v7x has only 64 MiB -> keep the double-buffered in+out working set small.
    """
    try:
        cap = pltpu.get_tpu_info().vmem_capacity_bytes
    except Exception:  # not resolvable -> assume the smallest (v7x-like) chip
        cap = 64 * 1024 * 1024
    if cap >= 100 * 1024 * 1024:          # v5e / v6e class
        return 4 * 1024 * 1024, 64 * 1024 * 1024
    return 2 * 1024 * 1024, 32 * 1024 * 1024   # v7x class


# ----------------------------------------------------------------------------
# Batched 2-D transpose kernel: (L, M, N) -> (L, N, M)
# ----------------------------------------------------------------------------
def _btranspose_kernel(x_ref, o_ref, *, sub_m, sub_n):
    lb, bm, bn = x_ref.shape

    def transpose_one(l):
        # Sub-tiled transpose: read (si, sj), transpose (XLU), write (sj, si).
        # Keeps the live value small (no monolithic VMEM temporary / vreg
        # spill) and lets vld / vxpose / vst overlap in separate bundle slots.
        for i0 in range(0, bm, sub_m):
            si = min(sub_m, bm - i0)
            for j0 in range(0, bn, sub_n):
                sj = min(sub_n, bn - j0)
                o_ref[l, pl.ds(j0, sj), pl.ds(i0, si)] = (
                    x_ref[l, pl.ds(i0, si), pl.ds(j0, sj)].T)

    if lb <= 8:
        for l in range(lb):          # short static unroll (LLO-visible)
            transpose_one(l)
    else:
        def body(l, carry):
            transpose_one(l)
            return carry
        jax.lax.fori_loop(0, lb, body, 0)


def _choose_tiles(L, M, N, itemsize, budget_bytes):
    """Pick (Lb, bm, bn).

    Tiled (non-full) dims serve as lane on one side of the transpose and
    sublane on the other, so they must be multiples of 128 (which also covers
    bf16/int8 sublane packing of 16/32).  Tiles are grown toward the budget so
    the kernel stays HBM-bound, L is batched to amortize per-grid-step
    overhead, then everything is shrunk just enough to leave >= 8 grid steps
    for v7x's two TensorCores.
    """
    max_elems = max(budget_bytes // itemsize, _LANE * _LANE)

    def fit(d, cap):
        if d <= cap:
            return d                                   # full extent: always legal
        return max(_LANE, (cap // _LANE) * _LANE)      # tiled: multiple of 128

    if M * N <= max_elems:                             # whole (M, N) plane fits
        bm, bn = M, N
    else:
        side = max(int(max_elems ** 0.5), _LANE)       # square-ish (XLU-friendly)
        bm = fit(M, side)
        bn = fit(N, max(max_elems // bm, _LANE))
        bm = fit(M, max(max_elems // bn, _LANE))       # re-spend leftover budget

    # Batch several L elements per grid step when the per-plane tile is small.
    lb = max(1, min(L, max_elems // (bm * bn)))

    def steps(lb_, bm_, bn_):
        return pl.cdiv(L, lb_) * pl.cdiv(M, bm_) * pl.cdiv(N, bn_)

    while lb > 1 and steps(lb, bm, bn) < 8:
        lb = max(1, lb // 2)
    while steps(lb, bm, bn) < 8 and max(bm, bn) >= 2 * _LANE:
        if bm >= bn:
            bm = max(_LANE, ((bm // 2) // _LANE) * _LANE)
        else:
            bn = max(_LANE, ((bn // 2) // _LANE) * _LANE)
    return lb, bm, bn


def _batched_transpose(x3, lb=None, bm=None, bn=None):
    """(L, M, N) -> (L, N, M) in a single Pallas HBM pass."""
    L, M, N = x3.shape
    itemsize = jnp.dtype(x3.dtype).itemsize
    budget, vmem_limit = _vmem_config()
    if lb is None or bm is None or bn is None:
        lb, bm, bn = _choose_tiles(L, M, N, itemsize, budget)

    kernel = functools.partial(
        _btranspose_kernel, sub_m=min(bm, _SUB), sub_n=min(bn, _SUB))

    # Grid order (L-blocks, N-tiles, M-tiles): the M-tile index is innermost so
    # consecutive steps write adjacent output blocks (HBM write locality).
    grid = (pl.cdiv(L, lb), pl.cdiv(N, bn), pl.cdiv(M, bm))

    return pl.pallas_call(
        kernel,
        out_shape=jax.ShapeDtypeStruct((L, N, M), x3.dtype),
        grid_spec=pltpu.PrefetchScalarGridSpec(
            num_scalar_prefetch=0,
            grid=grid,
            in_specs=[pl.BlockSpec((lb, bm, bn), lambda b, j, i: (b, i, j))],
            out_specs=pl.BlockSpec((lb, bn, bm), lambda b, j, i: (b, j, i)),
        ),
        compiler_params=pltpu.CompilerParams(
            dimension_semantics=("parallel", "parallel", "parallel"),
            vmem_limit_bytes=vmem_limit,
        ),
    )(x3)


# ----------------------------------------------------------------------------
# General permute wrapper
# ----------------------------------------------------------------------------
def permute_pallas(x, dims):
    ndim = x.ndim
    dims = tuple(int(d) % ndim for d in dims)
    if sorted(dims) != list(range(ndim)):
        raise ValueError(f"dims {dims} is not a permutation of range({ndim})")
    out_shape = tuple(x.shape[d] for d in dims)

    if ndim <= 1 or dims == tuple(range(ndim)):
        return x

    # Drop size-1 dims: moving them never changes the data order.
    keep = [d for d in range(ndim) if x.shape[d] != 1]
    if len(keep) <= 1:
        return x.reshape(out_shape)
    x_sq = x.reshape(tuple(x.shape[d] for d in keep))
    new_idx = {d: i for i, d in enumerate(keep)}
    dims_sq = [new_idx[d] for d in dims if x.shape[d] != 1]

    # Coalesce runs of input dims that stay adjacent and in-order in the output.
    groups = []
    for d in dims_sq:
        if groups and d == groups[-1][-1] + 1:
            groups[-1].append(d)
        else:
            groups.append([d])
    groups_in = sorted(groups, key=lambda g: g[0])            # input order
    sizes_in = [math.prod(x_sq.shape[d] for d in g) for g in groups_in]
    pos = {id(g): i for i, g in enumerate(groups_in)}
    gperm = tuple(pos[id(g)] for g in groups)                 # group permutation

    if gperm == tuple(range(len(gperm))):
        return x_sq.reshape(out_shape)                        # pure reshape

    if gperm == (1, 0):                                       # plain 2-D transpose
        L, (M, N) = 1, sizes_in
    elif gperm == (0, 2, 1):                                  # batched 2-D transpose
        L, M, N = sizes_in
    else:
        # TODO(synk): irreducible permutations that don't coalesce to a (batched)
        # 2-D transpose (e.g. (2,1,0), (1,0,2)) fall back to XLA's relayout.
        return jnp.transpose(x, dims)

    if min(M, N) < _MIN_TILEABLE_DIM:
        # Small-minor-dim case (D2Net's NCHW<->NHWC with C=4): a tiled kernel
        # would run at a few % of HBM roofline (masked 4/128-lane stores,
        # C*itemsize-byte DMA runs); XLA's relayout emitter wins here.
        # TODO(synk): lane-dense Pallas path that folds the small dim into a
        # 128-lane spatial chunk (bitcast-pack for bf16) instead of falling back.
        return jnp.transpose(x, dims)

    y = _batched_transpose(x_sq.reshape(L, M, N))
    return y.reshape(out_shape)


class Permute:
    """Mirrors the PyTorch Permute(nn.Module): forward(x) = x.permute(dims)."""

    def __init__(self, dims):
        self.dims = tuple(dims)

    def __call__(self, x):
        return permute_pallas(x, self.dims)


# ----------------------------------------------------------------------------
# Self-test
# ----------------------------------------------------------------------------
if __name__ == "__main__":
    key = jax.random.PRNGKey(0)
    keys = jax.random.split(key, 8)

    def check(x, dims):
        y = jax.block_until_ready(Permute(dims)(x))
        ref = jnp.transpose(x, dims)
        assert y.shape == ref.shape and y.dtype == ref.dtype
        assert jnp.array_equal(y, ref)
        return y

    # D2Net NCHW <-> NHWC with tiny C=4: dispatched to the XLA relayout
    # (lane-sparse case), still bit-exact.
    check(jax.random.normal(keys[0], (2, 4, 16, 16), dtype=jnp.float32), [0, 2, 3, 1])
    check(jax.random.normal(keys[1], (2, 16, 16, 4), dtype=jnp.float32), [0, 3, 1, 2])

    # D2Net-sized feature maps (C=128): Pallas batched-transpose path.
    check(jax.random.normal(keys[2], (2, 128, 16, 16), dtype=jnp.float32), [0, 2, 3, 1])
    check(jax.random.normal(keys[3], (2, 16, 16, 128), dtype=jnp.float32), [0, 3, 1, 2])

    # bf16 on the Pallas path (128-aligned tiles).
    check(jax.random.normal(keys[4], (2, 128, 16, 16)).astype(jnp.bfloat16), [0, 2, 3, 1])

    # Plain 2-D transpose (auto tiling + megacore step-count logic).
    check(jax.random.normal(keys[5], (256, 512), dtype=jnp.float32), [1, 0])

    # Many small batch planes: exercises L-batching (Lb > 8 -> fori_loop path).
    check(jax.random.normal(keys[6], (128, 64, 64), dtype=jnp.float32), [0, 2, 1])

    # Edge tiles: non-divisible L / M / N with explicit small tiles.
    x_edge = jax.random.normal(keys[7], (5, 320, 400), dtype=jnp.float32)
    y_edge = jax.block_until_ready(_batched_transpose(x_edge, lb=2, bm=128, bn=128))
    assert jnp.array_equal(y_edge, jnp.swapaxes(x_edge, 1, 2))

    print("KERNEL_OK")
</pallas_src>

<mosaic_0001>
module attributes {stable_mosaic.version = 11 : i64} {
  func.func @_btranspose_kernel(%arg0: i32, %arg1: i32, %arg2: i32, %arg3: memref<1x128x128xf32, #tpu.memory_space<vmem>>, %arg4: memref<1x128x128xf32, #tpu.memory_space<vmem>>) attributes {dimension_semantics = [#tpu.dimension_semantics<parallel>, #tpu.dimension_semantics<parallel>, #tpu.dimension_semantics<parallel>], iteration_bounds = array<i64: 2, 2, 1>, scalar_prefetch = 0 : i64, scratch_operands = 0 : i64, tpu.core_type = #tpu.core_type<tc>, window_params = [{transform_indices = @transform_0, window_bounds = array<i64: 1, 128, 128>}, {transform_indices = @transform_1, window_bounds = array<i64: 1, 128, 128>}]} {
    %c0 = arith.constant 0 : index
    %c0_0 = arith.constant 0 : index
    %c0_1 = arith.constant 0 : index
    %0 = vector.load %arg3[%c0, %c0_0, %c0_1] : memref<1x128x128xf32, #tpu.memory_space<vmem>>, vector<1x128x128xf32>
    %1 = vector.shape_cast %0 : vector<1x128x128xf32> to vector<128x128xf32>
    %2 = tpu.transpose %1, [1, 0] : vector<128x128xf32> -> vector<128x128xf32>
    %c0_2 = arith.constant 0 : index
    %c0_3 = arith.constant 0 : index
    %c0_4 = arith.constant 0 : index
    %3 = vector.load %arg4[%c0_2, %c0_3, %c0_4] : memref<1x128x128xf32, #tpu.memory_space<vmem>>, vector<1x128x128xf32>
    %4 = vector.shape_cast %3 : vector<1x128x128xf32> to vector<128x128xf32>
    %5 = vector.shape_cast %2 : vector<128x128xf32> to vector<1x128x128xf32>
    tpu.vector_store %arg4[%c0_2, %c0_3, %c0_4], %5 {strides = array<i32>} : memref<1x128x128xf32, #tpu.memory_space<vmem>>, vector<1x128x128xf32>,
    return
  }
  func.func @transform_0(%arg0: i32, %arg1: i32, %arg2: i32) -> (i32, i32, i32) {
    %c0_i32 = arith.constant 0 : i32
    return %arg0, %arg2, %arg1 : i32, i32, i32
  }
  func.func @transform_1(%arg0: i32, %arg1: i32, %arg2: i32) -> (i32, i32, i32) {
    %c0_i32 = arith.constant 0 : i32
    return %arg0, %arg1, %arg2 : i32, i32, i32
  }
}

</mosaic_0001>

<bundles_post_ra>
// kernel: tpu_custom_call.1
= control target key start
LH: loop header
LB: loop body
LE: loop exit
PB: predicated region body
PF: predicated region fallthrough
CT: control target
= control target key end

     0   :  { %6 = vsyncpa [#allocation3], 0  ;;  %s793_s0 = inlined_call_operand.hbm [shape: f32[2,128,256], index: 0, kind: input, shape index: {}]   ;;  %s794_s1 = inlined_call_operand.hbm [shape: f32[2,256,128], index: 1, kind: output, shape index: {}]  }
   0x1   :  { %8 = vsyncpa [#allocation3 + $0x1], 0 }
   0x2   :  { %9 = vsyncpa [#allocation4], 0 }
   0x3   :  { %11 = vsyncpa [#allocation4 + $0x1], 0  ;;  %s586_s6 = smov 0   ;;  %s588_s7 = smov 0  }
   0x4   :  { %s590_s8 = smov 0   ;;  %s592_s9 = smov 0  }
   0x5   :  { %s594_s10 = smov 0   ;;  %s596_s11 = smov 0  }
   0x6   :  { %s598_s12 = smov 0   ;;  %s600_s13 = smov 0  }
   0x7 LB: > { %s344_s14 = sadd.s32 4294967295, %s567_s13   ;;  %s345_s15 = sadd.s32 4294967294, %s567_s13   ;;  %s567_s13 = sphi %s600_s13, %s17_s13   ;;  %s563_s12 = sphi %s598_s12, %s806_s12   ;;  %s559_s11 = sphi %s596_s11, %s805_s11   ;;  %s555_s10 = sphi %s594_s10, %s804_s10   ;;  %s551_s9 = sphi %s592_s9, %s803_s9   ;;  %s547_s8 = sphi %s590_s8, %s802_s8   ;;  %s543_s7 = sphi %s588_s7, %s801_s7   ;;  %s539_s6 = sphi %s586_s6, %s800_s6  }
   0x8   : > { %s32_s16 = sadd.s32 1, %s559_s11  ;;  %s36_s17 = sadd.s32 1, %s563_s12 }
   0x9   : > { %p34_p0 = scmp.ge.s32.totalorder %s32_s16, 2  ;;  %s47_s18 = sadd.s32 1, %s547_s8 }
   0xa   : > { %p54_p1 = scmp.ne.s32.totalorder %s547_s8, %s543_s7  ;;  %p55_p2 = scmp.eq.s32.totalorder %s567_s13, 0 }
   0xb   : > { %s808_s16 = smov (%p34_p0, %s32_s16), 0  ;;  %s810_s17 = smov (!%p34_p0, %s36_s17), %s563_s12 }
   0xc   : > { %s43_s19 = ssub.s32 %s559_s11, %s808_s16  ;;  %p639_p3 = por %p55_p2, %p54_p1 }
   0xd   : > { %p38_p4 = scmp.ge.s32.totalorder %s810_s17, 2  ;;  %p60_p5 = scmp.ne.s32.totalorder %s543_s7, %s539_s6 }
   0xe   : > { %p61_p6 = scmp.eq.s32.totalorder %s344_s14, 0  ;;  %p88_p7 = scmp.eq.s32.totalorder %s344_s14, 3 }
   0xf   : > { %s812_s17 = smov (%p38_p4, %s810_s17), 0  ;;  %p94_p10 = scmp.eq.s32.totalorder %s345_s15, 3 }
  0x10   : > { %p647_p8 = por %p61_p6, %p60_p5  ;;  %p651_p9 = por %p88_p7, %p54_p1 }
  0x11   : > { %s40_s23 = ssub.s32 %s563_s12, %s812_s17  ;;  %p657_p12 = por %p94_p10, %p60_p5 }
  0x12   : > { %s44_s24 = sor.u32 %s43_s19, %s40_s23  ;;  %p372_p13 = scmp.lt.s32.totalorder %s567_s13, 4 }
  0x13   : > { %p45_p11 = scmp.eq.s32.totalorder %s44_s24, 0  ;;  %s114_s26 = sand.u32 1, %s547_s8  }
  0x14   : > { %s348_s28 = sshll.u32 %s114_s26, 7  ;;  %s349_s29 = sshll.u32 %s563_s12, 5 }
  0x15   : > { %s664_s27 = scalar_select %p45_p11, %s547_s8, %s47_s18  }
  0x16   : > { %s126_s30 = sadd.s32 %s559_s11, %s349_s29  ;;  %s118_s2 = scalar_lea.vmem [#allocation2], %s348_s28 }
  0x17   : > { %s129_s3 = sshll.u32 %s118_s2, 4  ;;  %s350_s4 = sshll.u32 %s126_s30, 7  ;;  %s130_s3 = int_to_ptr.vmem [resolvable:$true] %s129_s3 }
  0x18   : > { %s128_s15 = scalar_lea.hbm %s793_s0, %s350_s4  ;;  %p673_p0 = pnand %p372_p13, %p639_p3 }
  0x19   : > { %s115_s23 = scalar_lea.sflag [#allocation3], %s114_s26  ;;  %s456_s18 = scalar_lea.vmem %s130_s3, 2048 }
  0x1a   : > { %p445_p1 = pneg %p673_p0  ;;  %p457_p2 = scmp.ne.s32.totalorder %s130_s3, %s456_s18 }
  0x1b   : > { %s569_s24 = smov [#allocation2]  }
  0x1c   : > { %p459_p4 = pnand %p457_p2, %p445_p1  ;;  %s461_s28 = sshll.u32 %s569_s24, 4  ;;  %s462_s28 = int_to_ptr.vmem [resolvable:$false] %s461_s28 }
  0x1d   : > { %s463_s29 = scalar_lea.vmem %s462_s28, 4096  ;;  %p464_p6 = scmp.lt.s32.totalorder %s130_s3, %s462_s28 }
  0x1e   : > { %p460_p5 = pneg %p459_p4  ;;  %p465_p7 = scmp.lt.s32.totalorder %s463_s29, %s456_s18 }
  0x20   : > { %p466_p10 = por %p465_p7, %p464_p6 }
  0x22   : > { %p467_p11 = pnand %p466_p10, %p460_p5 }
  0x24   : > { %470 = shalt.err (!%p467_p11)
}
  0x25   : > { %s570_s20 = smov 256   ;;  %s571_s26 = smov 128  }
  0x26   : > { %s572_s30 = smov 8   ;;  %p351_p3 = scmp.ge.s32.totalorder %s567_s13, 1 }
  0x27   : > { %367 = dma.hbm_to_vmem [thread:$0]  (!%p673_p0), %s128_s15, 2048, %s130_s3, %s115_s23, %s570_s20, %s571_s26, %s572_s30  }
  0x28   : > { %p137_p13 = scmp.lt.s32.totalorder %s567_s13, 5 }
  0x2a   : > { %p138_p1 = pnand %p351_p3, %p137_p13 }
  0x2b   : > { %s684_s2 = sand.u32 (!%p138_p1), 1, %s543_s7  }
  0x2c   : > { %141 = sbr.rel (%p138_p1) target bundleno = 250 (0xfa), region = 24  ;;  %s352_s4 = sshll.u32 (!%p138_p1), %s684_s2, 7 }
  0x2d   : > { %s144_s5 = scalar_lea.sflag (!%p138_p1), [#allocation3], %s684_s2  ;;  %s690_s14 = scalar_lea.vmem (!%p138_p1), [#allocation2], %s352_s4 }
  0x31   : > { %530 = dma.done.wait (%p647_p8), %s144_s5, 2048  }
  0x32   : > { %532 = vsyncadd (%p647_p8), %s144_s5, 4294965248  ;;  %v168_v0 = vld [vmem:[%s690_s14] sm:$0xff]  ;;  %v169_v1 = vld [vmem:[%s690_s14 + $0x8] sm:$0xff]  ;;  %s714_s21 = scalar_lea.vmem [#allocation5], %s352_s4  ;;  %s355_s3 = sshll.u32 %s551_s9, 4 }
  0x33   : > { %184 = vxpose.xlu0.b32.start [1/16] %v168_v0, 128  ;;  %v170_v2 = vld [vmem:[%s690_s14 + $0x10] sm:$0xff]  ;;  %v171_v3 = vld [vmem:[%s690_s14 + $0x18] sm:$0xff]  ;;  %v172_v4 = vld [vmem:[%s690_s14 + $0x20] sm:$0xff]  ;;  %s356_s15 = sshll.u32 %s555_s10, 5  ;;  %s249_s18 = sshll.u32 %s714_s21, 4  ;;  %s739_s18 = int_to_ptr.vmem [resolvable:$true] %s249_s18 }
  0x34   : > { %v173_v5 = vld [vmem:[%s690_s14 + $0x28] sm:$0xff]  ;;  %v174_v6 = vld [vmem:[%s690_s14 + $0x30] sm:$0xff]  ;;  %v175_v7 = vld [vmem:[%s690_s14 + $0x38] sm:$0xff]  ;;  %s246_s19 = sadd.s32 %s356_s15, %s355_s3  ;;  %s233_s9 = scalar_lea.sflag [#allocation4], %s684_s2 }
  0x35   : > { %v176_v8 = vld [vmem:[%s690_s14 + $0x40] sm:$0xff]  ;;  %v177_v9 = vld [vmem:[%s690_s14 + $0x48] sm:$0xff]  ;;  %v178_v10 = vld [vmem:[%s690_s14 + $0x50] sm:$0xff]  ;;  %s357_s23 = sshll.u32 %s246_s19, 7  ;;  %s471_s10 = scalar_lea.vmem %s739_s18, 2048 }
  0x36   : > { %v179_v11 = vld [vmem:[%s690_s14 + $0x58] sm:$0xff]  ;;  %v180_v12 = vld [vmem:[%s690_s14 + $0x60] sm:$0xff]  ;;  %v181_v13 = vld [vmem:[%s690_s14 + $0x68] sm:$0xff]  ;;  %s737_s29 = scalar_lea.hbm %s794_s1, %s357_s23  ;;  %p472_p8 = scmp.ne.s32.totalorder %s739_s18, %s471_s10 }
  0x37   : > { %185 = vxpose.xlu0.b32.cont [2/16] %v169_v1, 128  ;;  %v182_v14 = vld [vmem:[%s690_s14 + $0x70] sm:$0xff]  ;;  %v183_v15 = vld [vmem:[%s690_s14 + $0x78] sm:$0xff]  ;;  %s573_s20 = smov [#allocation5]  }
  0x38   : > { %p473_p0 = pnand %p472_p8, %p651_p9  ;;  %s475_s26 = sshll.u32 %s573_s20, 4  ;;  %s476_s26 = int_to_ptr.vmem [resolvable:$false] %s475_s26 }
  0x39   : > { %s477_s30 = scalar_lea.vmem %s476_s26, 4096  ;;  %p478_p4 = scmp.lt.s32.totalorder %s739_s18, %s476_s26 }
  0x3a   : > { %p474_p2 = pneg %p473_p0  ;;  %p479_p5 = scmp.lt.s32.totalorder %s477_s30, %s471_s10 }
  0x3b   : > { %186 = vxpose.xlu0.b32.cont [3/16] %v170_v2, 128 }
  0x3c   : > { %p480_p6 = por %p479_p5, %p478_p4 }
  0x3e   : > { %p481_p7 = pnand %p480_p6, %p474_p2 }
  0x3f   : > { %187 = vxpose.xlu0.b32.cont [4/16] %v171_v3, 128 }
  0x43   : > { %188 = vxpose.xlu0.b32.cont [5/16] %v172_v4, 128 }
  0x47   : > { %189 = vxpose.xlu0.b32.cont [6/16] %v173_v5, 128 }
  0x4b   : > { %190 = vxpose.xlu0.b32.cont [7/16] %v174_v6, 128 }
  0x4f   : > { %191 = vxpose.xlu0.b32.cont [8/16] %v175_v7, 128 }
  0x53   : > { %192 = vxpose.xlu0.b32.cont [9/16] %v176_v8, 128 }
  0x57   : > { %193 = vxpose.xlu0.b32.cont [10/16] %v177_v9, 128 }
  0x5b   : > { %194 = vxpose.xlu0.b32.cont [11/16] %v178_v10, 128 }
  0x5f   : > { %195 = vxpose.xlu0.b32.cont [12/16] %v179_v11, 128 }
  0x63   : > { %196 = vxpose.xlu0.b32.cont [13/16] %v180_v12, 128 }
  0x67   : > { %197 = vxpose.xlu0.b32.cont [14/16] %v181_v13, 128 }
  0x6b   : > { %198 = vxpose.xlu0.b32.cont [15/16] %v182_v14, 128 }
  0x6f   : > { %199 = vxpose.xlu0.b32.end [16/16] %v183_v15, 128 }
  0xaf   : > { %v200_v16 = vpop.trf.xlu0 }
  0xb0   : > { %216 = vst [vmem:[%s714_s21] sm:$0xff] %v200_v16 }
  0xb3   : > { %v201_v17 = vpop.trf.xlu0 }
  0xb4   : > { %217 = vst [vmem:[%s714_s21 + $0x8] sm:$0xff] %v201_v17 }
  0xb7   : > { %v202_v18 = vpop.trf.xlu0 }
  0xb8   : > { %218 = vst [vmem:[%s714_s21 + $0x10] sm:$0xff] %v202_v18 }
  0xbb   : > { %v203_v19 = vpop.trf.xlu0 }
  0xbc   : > { %219 = vst [vmem:[%s714_s21 + $0x18] sm:$0xff] %v203_v19 }
  0xbf   : > { %v204_v20 = vpop.trf.xlu0 }
  0xc0   : > { %220 = vst [vmem:[%s714_s21 + $0x20] sm:$0xff] %v204_v20 }
  0xc3   : > { %v205_v21 = vpop.trf.xlu0 }
  0xc4   : > { %221 = vst [vmem:[%s714_s21 + $0x28] sm:$0xff] %v205_v21 }
  0xc7   : > { %v206_v22 = vpop.trf.xlu0 }
  0xc8   : > { %222 = vst [vmem:[%s714_s21 + $0x30] sm:$0xff] %v206_v22 }
  0xcb   : > { %v207_v23 = vpop.trf.xlu0 }
  0xcc   : > { %223 = vst [vmem:[%s714_s21 + $0x38] sm:$0xff] %v207_v23 }
  0xcf   : > { %v208_v24 = vpop.trf.xlu0 }
  0xd0   : > { %224 = vst [vmem:[%s714_s21 + $0x40] sm:$0xff] %v208_v24 }
  0xd3   : > { %v209_v25 = vpop.trf.xlu0 }
  0xd4   : > { %225 = vst [vmem:[%s714_s21 + $0x48] sm:$0xff] %v209_v25 }
  0xd7   : > { %v210_v26 = vpop.trf.xlu0 }
  0xd8   : > { %226 = vst [vmem:[%s714_s21 + $0x50] sm:$0xff] %v210_v26 }
  0xdb   : > { %v211_v27 = vpop.trf.xlu0 }
  0xdc   : > { %227 = vst [vmem:[%s714_s21 + $0x58] sm:$0xff] %v211_v27 }
  0xdf   : > { %v212_v28 = vpop.trf.xlu0 }
  0xe0   : > { %228 = vst [vmem:[%s714_s21 + $0x60] sm:$0xff] %v212_v28 }
  0xe3   : > { %v213_v29 = vpop.trf.xlu0 }
  0xe4   : > { %229 = vst [vmem:[%s714_s21 + $0x68] sm:$0xff] %v213_v29 }
  0xe7   : > { %v214_v30 = vpop.trf.xlu0 }
  0xe8   : > { %230 = vst [vmem:[%s714_s21 + $0x70] sm:$0xff] %v214_v30 }
  0xeb   : > { %v215_v31 = vpop.trf.xlu0 }
  0xec   : > { %231 = vst [vmem:[%s714_s21 + $0x78] sm:$0xff] %v215_v31 }
  0xed   : > { %484 = shalt.err (!%p481_p7)
}
  0xee   : > { %s485_s4 = scalar_lea.hbm %s737_s29, 2048  ;;  %s489_s21 = scalar_lea.hbm %s794_s1, 8192 }
  0xef   : > { %p486_p10 = scmp.ne.s32.totalorder %s737_s29, %s485_s4  ;;  %p490_p13 = scmp.lt.s32.totalorder %s737_s29, %s794_s1 }
  0xf0   : > { %p491_p1 = scmp.lt.s32.totalorder %s489_s21, %s485_s4 }
  0xf1   : > { %p487_p11 = pnand %p486_p10, %p651_p9 }
  0xf2   : > { %p492_p8 = por %p491_p1, %p490_p13 }
  0xf3   : > { %p488_p3 = pneg %p487_p11 }
  0xf5   : > { %p493_p0 = pnand %p492_p8, %p488_p3 }
  0xf7   : > { %496 = shalt.err (!%p493_p0)
}
  0xf8   : > { %s574_s19 = smov 128   ;;  %s575_s23 = smov 8  }
  0xf9   : > { %362 = dma.vmem_to_hbm [thread:$0]  (%p651_p9), %s739_s18, 2048, %s737_s29, %s233_s9, %s574_s19, %s574_s19, %s575_s23  }
  0xfa PF: > { %p373_p2 = scmp.ge.s32.totalorder %s567_s13, 2  ;;  %s264_s24 = sand.u32 1, %s539_s6  }
  0xfb   : > { %s265_s28 = scalar_lea.sflag [#allocation4], %s264_s24 }
  0xfc   : > { %p369_p4 = pnand %p373_p2, %p657_p12 }
  0xfe   : > { %p370_p5 = pneg %p369_p4 }
 0x100   : > { %534 = dma.done.wait (%p370_p5), %s265_s28, 2048  }
 0x101   : > { %536 = vsyncadd (%p370_p5), %s265_s28, 4294965248  ;;  %s17_s13 = sadd.s32 1, %s567_s13   ;;  %s800_s6 = smov %s543_s7 }
 0x102   : > { %p14_p6 = scmp.ge.s32.totalorder %s17_s13, 6   ;;  %s801_s7 = smov %s547_s8 }
 0x103   : > { %s802_s8 = smov %s664_s27  ;;  %s803_s9 = smov %s559_s11 }
 0x104   : > { %s804_s10 = smov %s563_s12  ;;  %s805_s11 = smov %s808_s16 }
 0x105   : > { %s806_s12 = smov %s812_s17  ;;  %16 = sbr.rel (!%p14_p6) target bundleno = 7 (0x7), region = 69 }
 0x10a   :  { %270 = vsyncpa [#allocation3], 1 }
 0x10b   :  { %272 = vsyncpa [#allocation3 + $0x1], 1 }
 0x10c   :  { %273 = vsyncpa [#allocation4], 1 }
 0x10d   :  { %275 = vsyncpa [#allocation4 + $0x1], 1 }

</bundles_post_ra>
